<compile_context>
chip_gen: v5e
topology: v5e:2x2
jax: 0.10.0
libtpu: 0.0.40
codegen_flags: <defaults>
</compile_context>

<pallas_src>
import functools

import jax
import jax.numpy as jnp
from jax.experimental import pallas as pl
from jax.experimental.pallas import tpu as pltpu


def _rnn_regressor_kernel(ids_ref,                       # (T*B, 1) int32 (time-major)
                          shapes_ref,                    # (T*B, S)
                          embed_ref,                     # (V, D) embedding table
                          w_s_ref, b_s_ref,              # (S, D), (1, D)
                          w_ih_ref,                      # (D, 3H) packed [r|z|n]
                          gb_ref,                        # (1, 3H) folded biases
                          w_hh_ref,                      # (H, 3H) packed [r|z|n]
                          b_hhn_ref,                     # (1, H)  (multiplied by r)
                          w_r_ref,                       # (1, H)
                          b_r_ref,                       # (1, 1) SMEM
                          out_ref,                       # (B, 1)
                          gi_s,                          # VMEM (T*B, 3H) scratch
                          *, seq_len, batch, hidden, vocab):
    tb = seq_len * batch

    # --- embed_layer for all timesteps at once.
    # Embedding gather fused in-kernel as a one-hot matmul (table is tiny and
    # VMEM-resident); exact for 0/1 one-hot rows.
    onehot = (ids_ref[...] ==
              jax.lax.broadcasted_iota(jnp.int32, (tb, vocab), 1)
              ).astype(jnp.float32)                                   # (T*B, V)
    x = (jnp.dot(onehot, embed_ref[...], preferred_element_type=jnp.float32)
         + jnp.dot(shapes_ref[...], w_s_ref[...],
                   preferred_element_type=jnp.float32)
         + b_s_ref[...])                                              # (T*B, D)

    # --- GRU input-side projections: ONE fused (T*B, D) x (D, 3H) matmul.
    # b_hh for r/z is folded additively into gb (valid: those biases are purely
    # additive); b_hh_n stays separate because PyTorch multiplies it by r.
    gi_s[...] = jnp.dot(x, w_ih_ref[...],
                        preferred_element_type=jnp.float32) + gb_ref[...]

    # Hoist recurrent weights out of the loop (fine at H<=64; at larger H read
    # the refs inside the loop instead to avoid vreg spills).
    w_hh = w_hh_ref[...]                                              # (H, 3H)
    b_hhn = b_hhn_ref[...]                                            # (1, H)

    h0 = jnp.zeros((batch, hidden), jnp.float32)

    def step(t, carry):
        h, acc = carry
        off = pl.multiple_of(t * batch, batch)       # contiguous (B, 3H) slab
        gi_t = gi_s[pl.ds(off, batch), :]                             # (B, 3H)
        # ONE MXU push/pop per step for the whole recurrent projection.
        gh = jnp.dot(h, w_hh, preferred_element_type=jnp.float32)     # (B, 3H)
        # Gate extraction = static lane slices (XLU slot, off the MXU path).
        rz = jax.nn.sigmoid(gi_t[:, :2 * hidden] + gh[:, :2 * hidden])
        r = rz[:, :hidden]
        z = rz[:, hidden:]
        n = jnp.tanh(gi_t[:, 2 * hidden:] + r * (gh[:, 2 * hidden:] + b_hhn))
        h_new = (1.0 - z) * n + z * h
        return h_new, acc + h_new

    # Full unroll is fine for short T / small H; back off at large H to avoid
    # instruction-memory / vreg blowup.
    unroll = True if hidden <= 64 else 2
    h, acc = jax.lax.fori_loop(0, seq_len, step, (h0, h0), unroll=unroll)

    # --- aggregator (mean) + dropout(p=0) + regressor + sigmoid.
    mean = acc * (1.0 / seq_len)
    # Regressor as VPU multiply + lane reduction (avoids an N=1 MXU matmul).
    logits = jnp.sum(mean * w_r_ref[...], axis=-1, keepdims=True) + b_r_ref[0, 0]
    out_ref[...] = jax.nn.sigmoid(logits)


def prepare_params(params):
    """One-time (init-time) weight packing / bias folding — NOT per call."""
    H = params["w_hh"].shape[0]
    b_ih, b_hh = params["b_ih"], params["b_hh"]
    return {
        "embed_table": params["embed_table"],                    # (V, D)
        "w_s": params["w_s"],                                    # (S, D)
        "b_s": params["b_s"],                                    # (1, D)
        "w_ih": params["w_ih"],                                  # (D, 3H) packed
        "gb": jnp.concatenate(                                   # (1, 3H)
            [b_ih[:, :2 * H] + b_hh[:, :2 * H], b_ih[:, 2 * H:]], axis=1),
        "w_hh": params["w_hh"],                                  # (H, 3H) packed
        "b_hhn": b_hh[:, 2 * H:],                                # (1, H)
        "w_r_t": params["w_r"].T,                                # (1, H)
        "b_r": params["b_r"],                                    # (1, 1)
    }


def rnn_shape_regressor(node_ids, shapes, prep):
    """node_ids: [B, T] int32, shapes: [B, T, S] f32, prep: prepare_params(...)."""
    B, T = node_ids.shape
    S = shapes.shape[-1]
    V, D = prep["embed_table"].shape
    H = prep["w_hh"].shape[0]

    # Time-major flattening.  Only the int32 ids (free) and the tiny shapes
    # tensor get transposed here; everything else was prepacked at init and the
    # embedding gather happens inside the kernel.
    ids_tm = node_ids.T.reshape(T * B, 1)
    shapes_tm = jnp.transpose(shapes, (1, 0, 2)).reshape(T * B, S)

    # VMEM budget guard (v7x: 64 MiB physical / 32 MiB scoped default).
    approx_vmem = 4 * (T * B * (1 + S + D + 3 * H)
                       + V * D + S * D + D * 3 * H + H * 3 * H + 8 * H + 2 * D)
    assert approx_vmem < 24 * 1024 * 1024, (
        "TODO(synk): chunk T (grid axis / emit_pipeline) before VMEM overflows")

    kernel = functools.partial(_rnn_regressor_kernel,
                               seq_len=T, batch=B, hidden=H, vocab=V)

    vmem = lambda: pl.BlockSpec(memory_space=pltpu.MemorySpace.VMEM)
    smem = lambda: pl.BlockSpec(memory_space=pltpu.MemorySpace.SMEM)

    return pl.pallas_call(
        kernel,
        out_shape=jax.ShapeDtypeStruct((B, 1), jnp.float32),
        in_specs=[vmem() for _ in range(10)] + [smem()],
        out_specs=pl.BlockSpec(memory_space=pltpu.MemorySpace.VMEM),
        scratch_shapes=[pltpu.VMEM((T * B, 3 * H), jnp.float32)],
    )(ids_tm, shapes_tm,
      prep["embed_table"], prep["w_s"], prep["b_s"],
      prep["w_ih"], prep["gb"], prep["w_hh"], prep["b_hhn"],
      prep["w_r_t"], prep["b_r"])


def rnn_shape_regressor_ref(node_ids, shapes, params):
    """Pure-JAX reference of the same forward pass (PyTorch GRU semantics)."""
    node_emb = jnp.take(params["embed_table"], node_ids, axis=0)
    x = node_emb + shapes @ params["w_s"] + params["b_s"]            # [B, T, D]
    B, T, _ = x.shape
    H = params["w_hh"].shape[0]
    h = jnp.zeros((B, H), jnp.float32)
    acc = jnp.zeros((B, H), jnp.float32)
    for t in range(T):
        gi = x[:, t, :] @ params["w_ih"] + params["b_ih"]
        gh = h @ params["w_hh"] + params["b_hh"]
        i_r, i_z, i_n = gi[:, :H], gi[:, H:2 * H], gi[:, 2 * H:]
        h_r, h_z, h_n = gh[:, :H], gh[:, H:2 * H], gh[:, 2 * H:]
        r = jax.nn.sigmoid(i_r + h_r)
        z = jax.nn.sigmoid(i_z + h_z)
        n = jnp.tanh(i_n + r * h_n)
        h = (1.0 - z) * n + z * h
        acc = acc + h
    mean = acc / T
    return jax.nn.sigmoid(mean @ params["w_r"] + params["b_r"])


def make_params(key, vocab, shape_feat, embed_dim, hidden):
    ks = jax.random.split(key, 10)
    scale = 0.1
    return {
        "embed_table": scale * jax.random.normal(ks[0], (vocab, embed_dim), jnp.float32),
        "w_s": scale * jax.random.normal(ks[1], (shape_feat, embed_dim), jnp.float32),
        "b_s": scale * jax.random.normal(ks[2], (1, embed_dim), jnp.float32),
        "w_ih": scale * jax.random.normal(ks[3], (embed_dim, 3 * hidden), jnp.float32),
        "w_hh": scale * jax.random.normal(ks[4], (hidden, 3 * hidden), jnp.float32),
        "b_ih": scale * jax.random.normal(ks[5], (1, 3 * hidden), jnp.float32),
        "b_hh": scale * jax.random.normal(ks[6], (1, 3 * hidden), jnp.float32),
        "w_r": scale * jax.random.normal(ks[7], (hidden, 1), jnp.float32),
        "b_r": scale * jax.random.normal(ks[8], (1, 1), jnp.float32),
    }


if __name__ == "__main__":
    B, T, S = 8, 8, 8          # batch, seq len, shape-feature dim
    VOCAB, D, H = 16, 32, 32   # node vocab, embed dim, hidden size

    key = jax.random.PRNGKey(0)
    k_ids, k_shapes, k_params = jax.random.split(key, 3)

    node_ids = jax.random.randint(k_ids, (B, T), 0, VOCAB, dtype=jnp.int32)
    shapes = jax.random.uniform(k_shapes, (B, T, S), jnp.float32)
    params = make_params(k_params, VOCAB, S, D, H)

    # One-time weight packing (outside the per-call hot path).
    prep = prepare_params(params)

    # Single-dispatch hot path: wrapper glue + pallas_call fused under jit.
    fwd = jax.jit(rnn_shape_regressor)
    out = fwd(node_ids, shapes, prep)
    out = jax.block_until_ready(out)

    ref = rnn_shape_regressor_ref(node_ids, shapes, params)
    assert out.shape == (B, 1)
    assert jnp.allclose(out, ref, rtol=2e-4, atol=2e-5), (out, ref)

    print("KERNEL_OK")
</pallas_src>

<mosaic_0001>
module attributes {stable_mosaic.version = 11 : i64} {
  func.func @_rnn_regressor_kernel(%arg0: memref<64x1xi32, #tpu.memory_space<vmem>>, %arg1: memref<64x8xf32, #tpu.memory_space<vmem>>, %arg2: memref<16x32xf32, #tpu.memory_space<vmem>>, %arg3: memref<8x32xf32, #tpu.memory_space<vmem>>, %arg4: memref<1x32xf32, #tpu.memory_space<vmem>>, %arg5: memref<32x96xf32, #tpu.memory_space<vmem>>, %arg6: memref<1x96xf32, #tpu.memory_space<vmem>>, %arg7: memref<32x96xf32, #tpu.memory_space<vmem>>, %arg8: memref<1x32xf32, #tpu.memory_space<vmem>>, %arg9: memref<1x32xf32, #tpu.memory_space<vmem>>, %arg10: memref<1x1xf32, #tpu.memory_space<smem>>, %arg11: memref<8x1xf32, #tpu.memory_space<vmem>>, %arg12: memref<64x96xf32, #tpu.memory_space<vmem>>) attributes {dimension_semantics = [], scalar_prefetch = 0 : i64, scratch_operands = 1 : i64, tpu.core_type = #tpu.core_type<tc>} {
    %c0 = arith.constant 0 : index
    %c0_0 = arith.constant 0 : index
    %0 = vector.load %arg0[%c0, %c0_0] : memref<64x1xi32, #tpu.memory_space<vmem>>, vector<64x1xi32>
    %1 = tpu.iota {dimensions = array<i32: 1>} : vector<64x16xi32>
    %2 = vector.broadcast %0 : vector<64x1xi32> to vector<64x16xi32>
    %3 = arith.cmpi eq, %2, %1 : vector<64x16xi32>
    %4 = arith.extui %3 : vector<64x16xi1> to vector<64x16xi32>
    %5 = arith.sitofp %4 : vector<64x16xi32> to vector<64x16xf32>
    %c0_1 = arith.constant 0 : index
    %c0_2 = arith.constant 0 : index
    %6 = vector.load %arg2[%c0_1, %c0_2] : memref<16x32xf32, #tpu.memory_space<vmem>>, vector<16x32xf32>
    %cst = arith.constant dense<0.000000e+00> : vector<64x32xf32>
    %7 = tpu.matmul %5, %6, %cst {dimension_numbers = #tpu.dot_dimension_numbers<[1], [0], [0], [1], [0, 0, 1, 1], [], []>} : vector<64x16xf32>, vector<16x32xf32>, vector<64x32xf32> -> vector<64x32xf32>
    %c0_3 = arith.constant 0 : index
    %c0_4 = arith.constant 0 : index
    %8 = vector.load %arg1[%c0_3, %c0_4] : memref<64x8xf32, #tpu.memory_space<vmem>>, vector<64x8xf32>
    %c0_5 = arith.constant 0 : index
    %c0_6 = arith.constant 0 : index
    %9 = vector.load %arg3[%c0_5, %c0_6] : memref<8x32xf32, #tpu.memory_space<vmem>>, vector<8x32xf32>
    %cst_7 = arith.constant dense<0.000000e+00> : vector<64x32xf32>
    %10 = tpu.matmul %8, %9, %cst_7 {dimension_numbers = #tpu.dot_dimension_numbers<[1], [0], [0], [1], [0, 0, 1, 1], [], []>} : vector<64x8xf32>, vector<8x32xf32>, vector<64x32xf32> -> vector<64x32xf32>
    %11 = arith.addf %7, %10 : vector<64x32xf32>
    %c0_8 = arith.constant 0 : index
    %c0_9 = arith.constant 0 : index
    %12 = vector.load %arg4[%c0_8, %c0_9] : memref<1x32xf32, #tpu.memory_space<vmem>>, vector<1x32xf32>
    %13 = vector.broadcast %12 : vector<1x32xf32> to vector<64x32xf32>
    %14 = arith.addf %11, %13 : vector<64x32xf32>
    %c0_10 = arith.constant 0 : index
    %c0_11 = arith.constant 0 : index
    %15 = vector.load %arg5[%c0_10, %c0_11] : memref<32x96xf32, #tpu.memory_space<vmem>>, vector<32x96xf32>
    %cst_12 = arith.constant dense<0.000000e+00> : vector<64x96xf32>
    %16 = tpu.matmul %14, %15, %cst_12 {dimension_numbers = #tpu.dot_dimension_numbers<[1], [0], [0], [1], [0, 0, 1, 1], [], []>} : vector<64x32xf32>, vector<32x96xf32>, vector<64x96xf32> -> vector<64x96xf32>
    %c0_13 = arith.constant 0 : index
    %c0_14 = arith.constant 0 : index
    %17 = vector.load %arg6[%c0_13, %c0_14] : memref<1x96xf32, #tpu.memory_space<vmem>>, vector<1x96xf32>
    %18 = vector.broadcast %17 : vector<1x96xf32> to vector<64x96xf32>
    %19 = arith.addf %16, %18 : vector<64x96xf32>
    %c0_15 = arith.constant 0 : index
    %c0_16 = arith.constant 0 : index
    %20 = vector.load %arg12[%c0_15, %c0_16] : memref<64x96xf32, #tpu.memory_space<vmem>>, vector<64x96xf32>
    tpu.vector_store %arg12[%c0_15, %c0_16], %19 {strides = array<i32>} : memref<64x96xf32, #tpu.memory_space<vmem>>, vector<64x96xf32>,
    %c0_17 = arith.constant 0 : index
    %c0_18 = arith.constant 0 : index
    %21 = vector.load %arg7[%c0_17, %c0_18] : memref<32x96xf32, #tpu.memory_space<vmem>>, vector<32x96xf32>
    %c0_19 = arith.constant 0 : index
    %c0_20 = arith.constant 0 : index
    %22 = vector.load %arg8[%c0_19, %c0_20] : memref<1x32xf32, #tpu.memory_space<vmem>>, vector<1x32xf32>
    %cst_21 = arith.constant 0.000000e+00 : f32
    %23 = vector.broadcast %cst_21 : f32 to vector<8x32xf32>
    %c0_i32 = arith.constant 0 : i32
    %c8_i32 = arith.constant 8 : i32
    %24 = arith.muli %c0_i32, %c8_i32 : i32
    %25 = tpu.assume_multiple %24, 8 : i32
    %26 = arith.index_cast %25 : i32 to index
    %c0_22 = arith.constant 0 : index
    %27 = vector.load %arg12[%26, %c0_22] : memref<64x96xf32, #tpu.memory_space<vmem>>, vector<8x96xf32>
    %cst_23 = arith.constant dense<0.000000e+00> : vector<8x96xf32>
    %28 = tpu.matmul %23, %21, %cst_23 {dimension_numbers = #tpu.dot_dimension_numbers<[1], [0], [0], [1], [0, 0, 1, 1], [], []>} : vector<8x32xf32>, vector<32x96xf32>, vector<8x96xf32> -> vector<8x96xf32>
    %29 = vector.extract_strided_slice %27 {offsets = [0, 0], sizes = [8, 64], strides = [1, 1]} : vector<8x96xf32> to vector<8x64xf32>
    %30 = vector.extract_strided_slice %28 {offsets = [0, 0], sizes = [8, 64], strides = [1, 1]} : vector<8x96xf32> to vector<8x64xf32>
    %31 = arith.addf %29, %30 : vector<8x64xf32>
    %32 = arith.negf %31 : vector<8x64xf32>
    %33 = math.exp %32 : vector<8x64xf32>
    %cst_24 = arith.constant 1.000000e+00 : f32
    %34 = vector.broadcast %cst_24 : f32 to vector<8x64xf32>
    %35 = arith.addf %34, %33 : vector<8x64xf32>
    %36 = arith.divf %34, %35 : vector<8x64xf32>
    %37 = vector.extract_strided_slice %36 {offsets = [0, 0], sizes = [8, 32], strides = [1, 1]} : vector<8x64xf32> to vector<8x32xf32>
    %38 = vector.extract_strided_slice %36 {offsets = [0, 32], sizes = [8, 32], strides = [1, 1]} : vector<8x64xf32> to vector<8x32xf32>
    %39 = vector.extract_strided_slice %27 {offsets = [0, 64], sizes = [8, 32], strides = [1, 1]} : vector<8x96xf32> to vector<8x32xf32>
    %40 = vector.extract_strided_slice %28 {offsets = [0, 64], sizes = [8, 32], strides = [1, 1]} : vector<8x96xf32> to vector<8x32xf32>
    %41 = vector.broadcast %22 : vector<1x32xf32> to vector<8x32xf32>
    %42 = arith.addf %40, %41 : vector<8x32xf32>
    %43 = arith.mulf %37, %42 : vector<8x32xf32>
    %44 = arith.addf %39, %43 : vector<8x32xf32>
    %45 = math.tanh %44 : vector<8x32xf32>
    %cst_25 = arith.constant 1.000000e+00 : f32
    %46 = vector.broadcast %cst_25 : f32 to vector<8x32xf32>
    %47 = arith.subf %46, %38 : vector<8x32xf32>
    %48 = arith.mulf %47, %45 : vector<8x32xf32>
    %49 = arith.mulf %38, %23 : vector<8x32xf32>
    %50 = arith.addf %48, %49 : vector<8x32xf32>
    %51 = arith.addf %23, %50 : vector<8x32xf32>
    %c1_i32 = arith.constant 1 : i32
    %c8_i32_26 = arith.constant 8 : i32
    %52 = arith.muli %c1_i32, %c8_i32_26 : i32
    %53 = tpu.assume_multiple %52, 8 : i32
    %54 = arith.index_cast %53 : i32 to index
    %c0_27 = arith.constant 0 : index
    %55 = vector.load %arg12[%54, %c0_27] : memref<64x96xf32, #tpu.memory_space<vmem>>, vector<8x96xf32>
    %cst_28 = arith.constant dense<0.000000e+00> : vector<8x96xf32>
    %56 = tpu.matmul %50, %21, %cst_28 {dimension_numbers = #tpu.dot_dimension_numbers<[1], [0], [0], [1], [0, 0, 1, 1], [], []>} : vector<8x32xf32>, vector<32x96xf32>, vector<8x96xf32> -> vector<8x96xf32>
    %57 = vector.extract_strided_slice %55 {offsets = [0, 0], sizes = [8, 64], strides = [1, 1]} : vector<8x96xf32> to vector<8x64xf32>
    %58 = vector.extract_strided_slice %56 {offsets = [0, 0], sizes = [8, 64], strides = [1, 1]} : vector<8x96xf32> to vector<8x64xf32>
    %59 = arith.addf %57, %58 : vector<8x64xf32>
    %60 = arith.negf %59 : vector<8x64xf32>
    %61 = math.exp %60 : vector<8x64xf32>
    %cst_29 = arith.constant 1.000000e+00 : f32
    %62 = vector.broadcast %cst_29 : f32 to vector<8x64xf32>
    %63 = arith.addf %62, %61 : vector<8x64xf32>
    %64 = arith.divf %62, %63 : vector<8x64xf32>
    %65 = vector.extract_strided_slice %64 {offsets = [0, 0], sizes = [8, 32], strides = [1, 1]} : vector<8x64xf32> to vector<8x32xf32>
    %66 = vector.extract_strided_slice %64 {offsets = [0, 32], sizes = [8, 32], strides = [1, 1]} : vector<8x64xf32> to vector<8x32xf32>
    %67 = vector.extract_strided_slice %55 {offsets = [0, 64], sizes = [8, 32], strides = [1, 1]} : vector<8x96xf32> to vector<8x32xf32>
    %68 = vector.extract_strided_slice %56 {offsets = [0, 64], sizes = [8, 32], strides = [1, 1]} : vector<8x96xf32> to vector<8x32xf32>
    %69 = vector.broadcast %22 : vector<1x32xf32> to vector<8x32xf32>
    %70 = arith.addf %68, %69 : vector<8x32xf32>
    %71 = arith.mulf %65, %70 : vector<8x32xf32>
    %72 = arith.addf %67, %71 : vector<8x32xf32>
    %73 = math.tanh %72 : vector<8x32xf32>
    %cst_30 = arith.constant 1.000000e+00 : f32
    %74 = vector.broadcast %cst_30 : f32 to vector<8x32xf32>
    %75 = arith.subf %74, %66 : vector<8x32xf32>
    %76 = arith.mulf %75, %73 : vector<8x32xf32>
    %77 = arith.mulf %66, %50 : vector<8x32xf32>
    %78 = arith.addf %76, %77 : vector<8x32xf32>
    %79 = arith.addf %51, %78 : vector<8x32xf32>
    %c2_i32 = arith.constant 2 : i32
    %c8_i32_31 = arith.constant 8 : i32
    %80 = arith.muli %c2_i32, %c8_i32_31 : i32
    %81 = tpu.assume_multiple %80, 8 : i32
    %82 = arith.index_cast %81 : i32 to index
    %c0_32 = arith.constant 0 : index
    %83 = vector.load %arg12[%82, %c0_32] : memref<64x96xf32, #tpu.memory_space<vmem>>, vector<8x96xf32>
    %cst_33 = arith.constant dense<0.000000e+00> : vector<8x96xf32>
    %84 = tpu.matmul %78, %21, %cst_33 {dimension_numbers = #tpu.dot_dimension_numbers<[1], [0], [0], [1], [0, 0, 1, 1], [], []>} : vector<8x32xf32>, vector<32x96xf32>, vector<8x96xf32> -> vector<8x96xf32>
    %85 = vector.extract_strided_slice %83 {offsets = [0, 0], sizes = [8, 64], strides = [1, 1]} : vector<8x96xf32> to vector<8x64xf32>
    %86 = vector.extract_strided_slice %84 {offsets = [0, 0], sizes = [8, 64], strides = [1, 1]} : vector<8x96xf32> to vector<8x64xf32>
    %87 = arith.addf %85, %86 : vector<8x64xf32>
    %88 = arith.negf %87 : vector<8x64xf32>
    %89 = math.exp %88 : vector<8x64xf32>
    %cst_34 = arith.constant 1.000000e+00 : f32
    %90 = vector.broadcast %cst_34 : f32 to vector<8x64xf32>
    %91 = arith.addf %90, %89 : vector<8x64xf32>
    %92 = arith.divf %90, %91 : vector<8x64xf32>
    %93 = vector.extract_strided_slice %92 {offsets = [0, 0], sizes = [8, 32], strides = [1, 1]} : vector<8x64xf32> to vector<8x32xf32>
    %94 = vector.extract_strided_slice %92 {offsets = [0, 32], sizes = [8, 32], strides = [1, 1]} : vector<8x64xf32> to vector<8x32xf32>
    %95 = vector.extract_strided_slice %83 {offsets = [0, 64], sizes = [8, 32], strides = [1, 1]} : vector<8x96xf32> to vector<8x32xf32>
    %96 = vector.extract_strided_slice %84 {offsets = [0, 64], sizes = [8, 32], strides = [1, 1]} : vector<8x96xf32> to vector<8x32xf32>
    %97 = vector.broadcast %22 : vector<1x32xf32> to vector<8x32xf32>
    %98 = arith.addf %96, %97 : vector<8x32xf32>
    %99 = arith.mulf %93, %98 : vector<8x32xf32>
    %100 = arith.addf %95, %99 : vector<8x32xf32>
    %101 = math.tanh %100 : vector<8x32xf32>
    %cst_35 = arith.constant 1.000000e+00 : f32
    %102 = vector.broadcast %cst_35 : f32 to vector<8x32xf32>
    %103 = arith.subf %102, %94 : vector<8x32xf32>
    %104 = arith.mulf %103, %101 : vector<8x32xf32>
    %105 = arith.mulf %94, %78 : vector<8x32xf32>
    %106 = arith.addf %104, %105 : vector<8x32xf32>
    %107 = arith.addf %79, %106 : vector<8x32xf32>
    %c3_i32 = arith.constant 3 : i32
    %c8_i32_36 = arith.constant 8 : i32
    %108 = arith.muli %c3_i32, %c8_i32_36 : i32
    %109 = tpu.assume_multiple %108, 8 : i32
    %110 = arith.index_cast %109 : i32 to index
    %c0_37 = arith.constant 0 : index
    %111 = vector.load %arg12[%110, %c0_37] : memref<64x96xf32, #tpu.memory_space<vmem>>, vector<8x96xf32>
    %cst_38 = arith.constant dense<0.000000e+00> : vector<8x96xf32>
    %112 = tpu.matmul %106, %21, %cst_38 {dimension_numbers = #tpu.dot_dimension_numbers<[1], [0], [0], [1], [0, 0, 1, 1], [], []>} : vector<8x32xf32>, vector<32x96xf32>, vector<8x96xf32> -> vector<8x96xf32>
    %113 = vector.extract_strided_slice %111 {offsets = [0, 0], sizes = [8, 64], strides = [1, 1]} : vector<8x96xf32> to vector<8x64xf32>
    %114 = vector.extract_strided_slice %112 {offsets = [0, 0], sizes = [8, 64], strides = [1, 1]} : vector<8x96xf32> to vector<8x64xf32>
    %115 = arith.addf %113, %114 : vector<8x64xf32>
    %116 = arith.negf %115 : vector<8x64xf32>
    %117 = math.exp %116 : vector<8x64xf32>
    %cst_39 = arith.constant 1.000000e+00 : f32
    %118 = vector.broadcast %cst_39 : f32 to vector<8x64xf32>
    %119 = arith.addf %118, %117 : vector<8x64xf32>
    %120 = arith.divf %118, %119 : vector<8x64xf32>
    %121 = vector.extract_strided_slice %120 {offsets = [0, 0], sizes = [8, 32], strides = [1, 1]} : vector<8x64xf32> to vector<8x32xf32>
    %122 = vector.extract_strided_slice %120 {offsets = [0, 32], sizes = [8, 32], strides = [1, 1]} : vector<8x64xf32> to vector<8x32xf32>
    %123 = vector.extract_strided_slice %111 {offsets = [0, 64], sizes = [8, 32], strides = [1, 1]} : vector<8x96xf32> to vector<8x32xf32>
    %124 = vector.extract_strided_slice %112 {offsets = [0, 64], sizes = [8, 32], strides = [1, 1]} : vector<8x96xf32> to vector<8x32xf32>
    %125 = vector.broadcast %22 : vector<1x32xf32> to vector<8x32xf32>
    %126 = arith.addf %124, %125 : vector<8x32xf32>
    %127 = arith.mulf %121, %126 : vector<8x32xf32>
    %128 = arith.addf %123, %127 : vector<8x32xf32>
    %129 = math.tanh %128 : vector<8x32xf32>
    %cst_40 = arith.constant 1.000000e+00 : f32
    %130 = vector.broadcast %cst_40 : f32 to vector<8x32xf32>
    %131 = arith.subf %130, %122 : vector<8x32xf32>
    %132 = arith.mulf %131, %129 : vector<8x32xf32>
    %133 = arith.mulf %122, %106 : vector<8x32xf32>
    %134 = arith.addf %132, %133 : vector<8x32xf32>
    %135 = arith.addf %107, %134 : vector<8x32xf32>
    %c4_i32 = arith.constant 4 : i32
    %c8_i32_41 = arith.constant 8 : i32
    %136 = arith.muli %c4_i32, %c8_i32_41 : i32
    %137 = tpu.assume_multiple %136, 8 : i32
    %138 = arith.index_cast %137 : i32 to index
    %c0_42 = arith.constant 0 : index
    %139 = vector.load %arg12[%138, %c0_42] : memref<64x96xf32, #tpu.memory_space<vmem>>, vector<8x96xf32>
    %cst_43 = arith.constant dense<0.000000e+00> : vector<8x96xf32>
    %140 = tpu.matmul %134, %21, %cst_43 {dimension_numbers = #tpu.dot_dimension_numbers<[1], [0], [0], [1], [0, 0, 1, 1], [], []>} : vector<8x32xf32>, vector<32x96xf32>, vector<8x96xf32> -> vector<8x96xf32>
    %141 = vector.extract_strided_slice %139 {offsets = [0, 0], sizes = [8, 64], strides = [1, 1]} : vector<8x96xf32> to vector<8x64xf32>
    %142 = vector.extract_strided_slice %140 {offsets = [0, 0], sizes = [8, 64], strides = [1, 1]} : vector<8x96xf32> to vector<8x64xf32>
    %143 = arith.addf %141, %142 : vector<8x64xf32>
    %144 = arith.negf %143 : vector<8x64xf32>
    %145 = math.exp %144 : vector<8x64xf32>
    %cst_44 = arith.constant 1.000000e+00 : f32
    %146 = vector.broadcast %cst_44 : f32 to vector<8x64xf32>
    %147 = arith.addf %146, %145 : vector<8x64xf32>
    %148 = arith.divf %146, %147 : vector<8x64xf32>
    %149 = vector.extract_strided_slice %148 {offsets = [0, 0], sizes = [8, 32], strides = [1, 1]} : vector<8x64xf32> to vector<8x32xf32>
    %150 = vector.extract_strided_slice %148 {offsets = [0, 32], sizes = [8, 32], strides = [1, 1]} : vector<8x64xf32> to vector<8x32xf32>
    %151 = vector.extract_strided_slice %139 {offsets = [0, 64], sizes = [8, 32], strides = [1, 1]} : vector<8x96xf32> to vector<8x32xf32>
    %152 = vector.extract_strided_slice %140 {offsets = [0, 64], sizes = [8, 32], strides = [1, 1]} : vector<8x96xf32> to vector<8x32xf32>
    %153 = vector.broadcast %22 : vector<1x32xf32> to vector<8x32xf32>
    %154 = arith.addf %152, %153 : vector<8x32xf32>
    %155 = arith.mulf %149, %154 : vector<8x32xf32>
    %156 = arith.addf %151, %155 : vector<8x32xf32>
    %157 = math.tanh %156 : vector<8x32xf32>
    %cst_45 = arith.constant 1.000000e+00 : f32
    %158 = vector.broadcast %cst_45 : f32 to vector<8x32xf32>
    %159 = arith.subf %158, %150 : vector<8x32xf32>
    %160 = arith.mulf %159, %157 : vector<8x32xf32>
    %161 = arith.mulf %150, %134 : vector<8x32xf32>
    %162 = arith.addf %160, %161 : vector<8x32xf32>
    %163 = arith.addf %135, %162 : vector<8x32xf32>
    %c5_i32 = arith.constant 5 : i32
    %c8_i32_46 = arith.constant 8 : i32
    %164 = arith.muli %c5_i32, %c8_i32_46 : i32
    %165 = tpu.assume_multiple %164, 8 : i32
    %166 = arith.index_cast %165 : i32 to index
    %c0_47 = arith.constant 0 : index
    %167 = vector.load %arg12[%166, %c0_47] : memref<64x96xf32, #tpu.memory_space<vmem>>, vector<8x96xf32>
    %cst_48 = arith.constant dense<0.000000e+00> : vector<8x96xf32>
    %168 = tpu.matmul %162, %21, %cst_48 {dimension_numbers = #tpu.dot_dimension_numbers<[1], [0], [0], [1], [0, 0, 1, 1], [], []>} : vector<8x32xf32>, vector<32x96xf32>, vector<8x96xf32> -> vector<8x96xf32>
    %169 = vector.extract_strided_slice %167 {offsets = [0, 0], sizes = [8, 64], strides = [1, 1]} : vector<8x96xf32> to vector<8x64xf32>
    %170 = vector.extract_strided_slice %168 {offsets = [0, 0], sizes = [8, 64], strides = [1, 1]} : vector<8x96xf32> to vector<8x64xf32>
    %171 = arith.addf %169, %170 : vector<8x64xf32>
    %172 = arith.negf %171 : vector<8x64xf32>
    %173 = math.exp %172 : vector<8x64xf32>
    %cst_49 = arith.constant 1.000000e+00 : f32
    %174 = vector.broadcast %cst_49 : f32 to vector<8x64xf32>
    %175 = arith.addf %174, %173 : vector<8x64xf32>
    %176 = arith.divf %174, %175 : vector<8x64xf32>
    %177 = vector.extract_strided_slice %176 {offsets = [0, 0], sizes = [8, 32], strides = [1, 1]} : vector<8x64xf32> to vector<8x32xf32>
    %178 = vector.extract_strided_slice %176 {offsets = [0, 32], sizes = [8, 32], strides = [1, 1]} : vector<8x64xf32> to vector<8x32xf32>
    %179 = vector.extract_strided_slice %167 {offsets = [0, 64], sizes = [8, 32], strides = [1, 1]} : vector<8x96xf32> to vector<8x32xf32>
    %180 = vector.extract_strided_slice %168 {offsets = [0, 64], sizes = [8, 32], strides = [1, 1]} : vector<8x96xf32> to vector<8x32xf32>
    %181 = vector.broadcast %22 : vector<1x32xf32> to vector<8x32xf32>
    %182 = arith.addf %180, %181 : vector<8x32xf32>
    %183 = arith.mulf %177, %182 : vector<8x32xf32>
    %184 = arith.addf %179, %183 : vector<8x32xf32>
    %185 = math.tanh %184 : vector<8x32xf32>
    %cst_50 = arith.constant 1.000000e+00 : f32
    %186 = vector.broadcast %cst_50 : f32 to vector<8x32xf32>
    %187 = arith.subf %186, %178 : vector<8x32xf32>
    %188 = arith.mulf %187, %185 : vector<8x32xf32>
    %189 = arith.mulf %178, %162 : vector<8x32xf32>
    %190 = arith.addf %188, %189 : vector<8x32xf32>
    %191 = arith.addf %163, %190 : vector<8x32xf32>
    %c6_i32 = arith.constant 6 : i32
    %c8_i32_51 = arith.constant 8 : i32
    %192 = arith.muli %c6_i32, %c8_i32_51 : i32
    %193 = tpu.assume_multiple %192, 8 : i32
    %194 = arith.index_cast %193 : i32 to index
    %c0_52 = arith.constant 0 : index
    %195 = vector.load %arg12[%194, %c0_52] : memref<64x96xf32, #tpu.memory_space<vmem>>, vector<8x96xf32>
    %cst_53 = arith.constant dense<0.000000e+00> : vector<8x96xf32>
    %196 = tpu.matmul %190, %21, %cst_53 {dimension_numbers = #tpu.dot_dimension_numbers<[1], [0], [0], [1], [0, 0, 1, 1], [], []>} : vector<8x32xf32>, vector<32x96xf32>, vector<8x96xf32> -> vector<8x96xf32>
    %197 = vector.extract_strided_slice %195 {offsets = [0, 0], sizes = [8, 64], strides = [1, 1]} : vector<8x96xf32> to vector<8x64xf32>
    %198 = vector.extract_strided_slice %196 {offsets = [0, 0], sizes = [8, 64], strides = [1, 1]} : vector<8x96xf32> to vector<8x64xf32>
    %199 = arith.addf %197, %198 : vector<8x64xf32>
    %200 = arith.negf %199 : vector<8x64xf32>
    %201 = math.exp %200 : vector<8x64xf32>
    %cst_54 = arith.constant 1.000000e+00 : f32
    %202 = vector.broadcast %cst_54 : f32 to vector<8x64xf32>
    %203 = arith.addf %202, %201 : vector<8x64xf32>
    %204 = arith.divf %202, %203 : vector<8x64xf32>
    %205 = vector.extract_strided_slice %204 {offsets = [0, 0], sizes = [8, 32], strides = [1, 1]} : vector<8x64xf32> to vector<8x32xf32>
    %206 = vector.extract_strided_slice %204 {offsets = [0, 32], sizes = [8, 32], strides = [1, 1]} : vector<8x64xf32> to vector<8x32xf32>
    %207 = vector.extract_strided_slice %195 {offsets = [0, 64], sizes = [8, 32], strides = [1, 1]} : vector<8x96xf32> to vector<8x32xf32>
    %208 = vector.extract_strided_slice %196 {offsets = [0, 64], sizes = [8, 32], strides = [1, 1]} : vector<8x96xf32> to vector<8x32xf32>
    %209 = vector.broadcast %22 : vector<1x32xf32> to vector<8x32xf32>
    %210 = arith.addf %208, %209 : vector<8x32xf32>
    %211 = arith.mulf %205, %210 : vector<8x32xf32>
    %212 = arith.addf %207, %211 : vector<8x32xf32>
    %213 = math.tanh %212 : vector<8x32xf32>
    %cst_55 = arith.constant 1.000000e+00 : f32
    %214 = vector.broadcast %cst_55 : f32 to vector<8x32xf32>
    %215 = arith.subf %214, %206 : vector<8x32xf32>
    %216 = arith.mulf %215, %213 : vector<8x32xf32>
    %217 = arith.mulf %206, %190 : vector<8x32xf32>
    %218 = arith.addf %216, %217 : vector<8x32xf32>
    %219 = arith.addf %191, %218 : vector<8x32xf32>
    %c7_i32 = arith.constant 7 : i32
    %c8_i32_56 = arith.constant 8 : i32
    %220 = arith.muli %c7_i32, %c8_i32_56 : i32
    %221 = tpu.assume_multiple %220, 8 : i32
    %222 = arith.index_cast %221 : i32 to index
    %c0_57 = arith.constant 0 : index
    %223 = vector.load %arg12[%222, %c0_57] : memref<64x96xf32, #tpu.memory_space<vmem>>, vector<8x96xf32>
    %cst_58 = arith.constant dense<0.000000e+00> : vector<8x96xf32>
    %224 = tpu.matmul %218, %21, %cst_58 {dimension_numbers = #tpu.dot_dimension_numbers<[1], [0], [0], [1], [0, 0, 1, 1], [], []>} : vector<8x32xf32>, vector<32x96xf32>, vector<8x96xf32> -> vector<8x96xf32>
    %225 = vector.extract_strided_slice %223 {offsets = [0, 0], sizes = [8, 64], strides = [1, 1]} : vector<8x96xf32> to vector<8x64xf32>
    %226 = vector.extract_strided_slice %224 {offsets = [0, 0], sizes = [8, 64], strides = [1, 1]} : vector<8x96xf32> to vector<8x64xf32>
    %227 = arith.addf %225, %226 : vector<8x64xf32>
    %228 = arith.negf %227 : vector<8x64xf32>
    %229 = math.exp %228 : vector<8x64xf32>
    %cst_59 = arith.constant 1.000000e+00 : f32
    %230 = vector.broadcast %cst_59 : f32 to vector<8x64xf32>
    %231 = arith.addf %230, %229 : vector<8x64xf32>
    %232 = arith.divf %230, %231 : vector<8x64xf32>
    %233 = vector.extract_strided_slice %232 {offsets = [0, 0], sizes = [8, 32], strides = [1, 1]} : vector<8x64xf32> to vector<8x32xf32>
    %234 = vector.extract_strided_slice %232 {offsets = [0, 32], sizes = [8, 32], strides = [1, 1]} : vector<8x64xf32> to vector<8x32xf32>
    %235 = vector.extract_strided_slice %223 {offsets = [0, 64], sizes = [8, 32], strides = [1, 1]} : vector<8x96xf32> to vector<8x32xf32>
    %236 = vector.extract_strided_slice %224 {offsets = [0, 64], sizes = [8, 32], strides = [1, 1]} : vector<8x96xf32> to vector<8x32xf32>
    %237 = vector.broadcast %22 : vector<1x32xf32> to vector<8x32xf32>
    %238 = arith.addf %236, %237 : vector<8x32xf32>
    %239 = arith.mulf %233, %238 : vector<8x32xf32>
    %240 = arith.addf %235, %239 : vector<8x32xf32>
    %241 = math.tanh %240 : vector<8x32xf32>
    %cst_60 = arith.constant 1.000000e+00 : f32
    %242 = vector.broadcast %cst_60 : f32 to vector<8x32xf32>
    %243 = arith.subf %242, %234 : vector<8x32xf32>
    %244 = arith.mulf %243, %241 : vector<8x32xf32>
    %245 = arith.mulf %234, %218 : vector<8x32xf32>
    %246 = arith.addf %244, %245 : vector<8x32xf32>
    %247 = arith.addf %219, %246 : vector<8x32xf32>
    %c8_i32_61 = arith.constant 8 : i32
    %cst_62 = arith.constant 1.250000e-01 : f32
    %248 = vector.broadcast %cst_62 : f32 to vector<8x32xf32>
    %249 = arith.mulf %247, %248 : vector<8x32xf32>
    %c0_63 = arith.constant 0 : index
    %c0_64 = arith.constant 0 : index
    %250 = vector.load %arg9[%c0_63, %c0_64] : memref<1x32xf32, #tpu.memory_space<vmem>>, vector<1x32xf32>
    %251 = vector.broadcast %250 : vector<1x32xf32> to vector<8x32xf32>
    %252 = arith.mulf %249, %251 : vector<8x32xf32>
    %cst_65 = arith.constant dense<0.000000e+00> : vector<8xf32>
    %253 = vector.multi_reduction <add>, %252, %cst_65 [1] : vector<8x32xf32> to vector<8xf32>
    %254 = vector.shape_cast %253 : vector<8xf32> to vector<8x1xf32>
    %c0_66 = arith.constant 0 : index
    %c0_67 = arith.constant 0 : index
    %255 = memref.load %arg10[%c0_66, %c0_67] : memref<1x1xf32, #tpu.memory_space<smem>>
    %256 = vector.broadcast %255 : f32 to vector<8x1xf32>
    %257 = arith.addf %254, %256 : vector<8x1xf32>
    %258 = arith.negf %257 : vector<8x1xf32>
    %259 = math.exp %258 : vector<8x1xf32>
    %cst_68 = arith.constant 1.000000e+00 : f32
    %260 = vector.broadcast %cst_68 : f32 to vector<8x1xf32>
    %261 = arith.addf %260, %259 : vector<8x1xf32>
    %262 = arith.divf %260, %261 : vector<8x1xf32>
    %c0_69 = arith.constant 0 : index
    %c0_70 = arith.constant 0 : index
    %263 = vector.load %arg11[%c0_69, %c0_70] : memref<8x1xf32, #tpu.memory_space<vmem>>, vector<8x1xf32>
    tpu.vector_store %arg11[%c0_69, %c0_70], %262 {strides = array<i32>} : memref<8x1xf32, #tpu.memory_space<vmem>>, vector<8x1xf32>,
    return
  }
}

</mosaic_0001>

<bundles_post_ra>
// kernel: rnn_shape_regressor.1
= control target key start
LH: loop header
LB: loop body
LE: loop exit
PB: predicated region body
PF: predicated region fallthrough
CT: control target
= control target key end

     0   :  { %v1041_v0 = vmov 0   ;;  %vm108_vm0 = vcmask 64512   ;;  %s1042_s16 = smov 64   ;;  %v1043_v12 = vmov 0.0   ;;  %v47_v13 = vlaneseq  ;;  %s1044_s28 = smov 96   ;;  %s1397_s0 = inlined_call_operand.vmem [shape: s32[64,1], index: 0, kind: input, shape index: {}]   ;;  %s1398_s2 = inlined_call_operand.vmem [shape: f32[16,32], index: 2, kind: input, shape index: {}]   ;;  %s1399_s8 = inlined_call_operand.vmem [shape: f32[1,32], index: 8, kind: input, shape index: {}]   ;;  %s1400_s3 = inlined_call_operand.vmem [shape: f32[8,32], index: 3, kind: input, shape index: {}]   ;;  %s1401_s1 = inlined_call_operand.vmem [shape: f32[64,8], index: 1, kind: input, shape index: {}]   ;;  %s1402_s7 = inlined_call_operand.vmem [shape: f32[32,96], index: 7, kind: input, shape index: {}]   ;;  %s1403_s4 = inlined_call_operand.vmem [shape: f32[1,32], index: 4, kind: input, shape index: {}]   ;;  %s1404_s5 = inlined_call_operand.vmem [shape: f32[32,96], index: 5, kind: input, shape index: {}]   ;;  %s1405_s6 = inlined_call_operand.vmem [shape: f32[1,96], index: 6, kind: input, shape index: {}]   ;;  %s1406_s9 = inlined_call_operand.vmem [shape: f32[1,32], index: 9, kind: input, shape index: {}]   ;;  %s1407_s10 = inlined_call_operand.<no memory space> [shape: f32[1,1], index: 10, kind: input, shape index: {}]   ;;  %s1408_s11 = inlined_call_operand.vmem [shape: f32[8,1], index: 11, kind: output, shape index: {}]  }
   0x1   :  { %982 = vset.pattern.permute.xlu0 %v1041_v0  ;;  %v39_v1 = vld [vmem:[%s1397_s0] sm:$0xff]  ;;  %v98_v2 = vld [vmem:[%s1398_s2 + $0x8] sm:$0xff]  ;;  %983 = vset.pattern.permute.xlu1 %v1041_v0  ;;  %v1125_v6 = vld [vmem:[%s1402_s7 + $0x18] sm:$0xff]  ;;  %vm174_vm1 = vcmask 130048   ;;  %vm260_vm3 = vcmask 261120   ;;  %vm326_vm4 = vcmask 785408  }
   0x2   :  { %50 = vperm.xlu0 %982, %v39_v1   ;;  %213 = vmatpush.msra.mxu1 %v98_v2  ;;  %v107_v3 = vld [vmem:[%s1400_s3] sm:$0xff]  ;;  %v1130_v7 = vld [vmem:[%s1402_s7 + $0x10] sm:$0xff]  ;;  %v255_v9 = vld [vmem:[%s1404_s5 + $0x18] sm:$0xff]  ;;  %v1162_v14 = vand.u32 127, %v47_v13  ;;  %s1045_s29 = smov 32  }
   0x3   :  { %984 = vset.pattern.permute.xlu2 %v1041_v0  ;;  %v97_v4 = vld [vmem:[%s1398_s2] sm:$0xff]  ;;  %148 = vmatpush.msra.mxu0 %v107_v3  ;;  %v1142_v10 = vld [vmem:[%s1402_s7 + $0x8] sm:$0xff]  ;;  %v254_v17 = vld [vmem:[%s1404_s5 + $0x10] sm:$0xff] }
   0x4   :  { %214 = vmatpush.msra.mxu1 %v97_v4  ;;  %v99_v5 = vld [vmem:[%s1401_s1] sm:$0xff]  ;;  %356 = vmatpush.msra.mxu3 %v1125_v6  ;;  %v253_v18 = vld [vmem:[%s1404_s5 + $0x8] sm:$0xff] }
   0x5   :  { %937 = vmatmul.msk.f32.vlgmr.msra.gmra.mxu0 %vm108_vm0, %v99_v5  ;;  %v985_v8 = vld [vmem:[%s1399_s8] ss:$0 sm:$0xff]  ;;  %297 = vmatpush.msra.mxu2 %v255_v9  ;;  %v40_v33 = vld [vmem:[%s1397_s0 + $0x8] sm:$0xff] }
   0x6   :  { %357 = vmatpush.msra.mxu3 %v1130_v7  ;;  %v1149_v11 = vld [vmem:[%s1402_s7] sm:$0xff]  ;;  %v100_v49 = vld [vmem:[%s1401_s1 + $0x8] sm:$0xff] }
   0x7   :  { %298 = vmatpush.msra.mxu2 %v254_v17  ;;  %v252_v19 = vld [vmem:[%s1404_s5] sm:$0xff] }
   0x8   :  { %358 = vmatpush.msra.mxu3 %v1142_v10  ;;  %v1183_v24 = vld [vmem:[%s1403_s4] ss:$0 sm:$0xff] }
   0x9   :  { %299 = vmatpush.msra.mxu2 %v253_v18  ;;  %v1190_v28 = vld [vmem:[%s1405_s6] ss:$0 sm:$0xff] }
   0xa   :  { %386 = vrot.lane.b32.xlu0 %v985_v8, %s1042_s16  ;;  %359 = vmatpush.msra.mxu3 %v1149_v11 }
   0xb   :  { %360 = vmatmul.f32.vlgmr.msra.gmra.mxu3 %v1043_v12  ;;  %300 = vmatpush.msra.mxu2 %v252_v19 }
   0xc   :  { %429 = vmatpush.msrb.mxu3 %v1125_v6 }
   0xd   :  { %938 = vmatmul.msk.f32.gmra.mxu0 %vm108_vm0, %v100_v49 }
   0xe   :  { %430 = vmatpush.msrb.mxu3 %v1130_v7 }
  0x10   :  { %431 = vmatpush.msrb.mxu3 %v1142_v10 }
  0x12   :  { %432 = vmatpush.msrb.mxu3 %v1149_v11 }
  0x14   :  { %497 = vmatpush.msra.mxu3 %v1125_v6 }
  0x16   :  { %498 = vmatpush.msra.mxu3 %v1130_v7 }
  0x18   :  { %499 = vmatpush.msra.mxu3 %v1142_v10 }
  0x1a   :  { %500 = vmatpush.msra.mxu3 %v1149_v11 }
  0x74   :  { %v51_v15 = vpop.permute.xlu0 %50 }
  0x75   :  { %vm73_vm2 = vcmp.eq.s32.totalorder %v51_v15, %v1162_v14 }
  0x76   :  { %v929_v16 = vsel %vm73_vm2, 1.0, %v1043_v12 }
  0x77   :  { %945 = vmatmul.msk.f32.vlgmr.msra.gmra.mxu1 %vm174_vm1, %v929_v16  ;;  %v41_v16 = vld [vmem:[%s1397_s0 + $0x10] sm:$0xff] }
  0x7c   :  { %v1176_v20 = vpop.permute.xlu0 %386 }
  0x82   :  { %v150_v23 = vpop.f32.mrf.mxu0 }
  0x8a   :  { %v153_v60 = vpop.f32.mrf.mxu0 }
  0x8e   :  { %v361_v21 = vpop.f32.mrf.mxu3 }
  0x8f   :  { %v389_v22 = vadd.f32 %v1176_v20, %v361_v21 }
  0x91   :  { %391 = vrot.lane.b32.xlu1 %v389_v22, %s1042_s16 }
  0x99   :  { %53 = vperm.xlu1 %983, %v40_v33   ;;  %v101_v33 = vld [vmem:[%s1401_s1 + $0x10] sm:$0xff] }
  0x9a   :  { %939 = vmatmul.msk.f32.gmra.mxu0 %vm108_vm0, %v101_v33 }
  0xf4   :  { %v216_v25 = vpop.f32.mrf.mxu1 }
  0xf5   :  { %v217_v26 = vadd.f32 %v216_v25, %v150_v23 }
  0xf7   :  { %v244_v27 = vadd.f32 %v1183_v24, %v217_v26 }
  0xf9   :  { %953 = vmatmul.msk.f32.vlgmr.msra.gmra.mxu2 %vm260_vm3, %v244_v27 }
 0x103   :  { %v392_v45 = vpop.permute.xlu1 %391 }
 0x10b   :  { %v54_v50 = vpop.permute.xlu1 %53 }
 0x10c   :  { %vm74_vm9 = vcmp.eq.s32.totalorder %v54_v50, %v1162_v14 }
 0x10d   :  { %v930_v51 = vsel %vm74_vm9, 1.0, %v1043_v12 }
 0x10e   :  { %946 = vmatmul.msk.f32.gmra.mxu1 %vm174_vm1, %v930_v51 }
 0x17c   :  { %v302_v29 = vpop.f32.mrf.mxu2 }
 0x17d   :  { %v303_v30 = vadd.f32 %v1190_v28, %v302_v29 }
 0x17f   :  { %327 = vst.msk [vmem:[#allocation2] sm:$0xff] %vm326_vm4, %v303_v30 }
 0x186   :  { %v340_v31 = vld [vmem:[#allocation2] sm:$0xff] }
 0x187   :  { %v364_v32 = vadd.f32 %v361_v21, %v340_v31 }
 0x189   :  { %v961_v34 = vmul.f32 -1.442695, %v364_v32 }
 0x18b   :  { %989 = vpow2.f32 %v961_v34  ;;  %v219_v61 = vpop.f32.mrf.mxu1 }
 0x18c   :  { %v220_v62 = vadd.f32 %v219_v61, %v153_v60 }
 0x18e   :  { %v245_v63 = vadd.f32 %v1183_v24, %v220_v62 }
 0x190   :  { %954 = vmatmul.msk.f32.gmra.mxu2 %vm260_vm3, %v245_v63 }
 0x191   :  { %v990_v35 = vpop.eup %989 }
 0x192   :  { %v368_v36 = vadd.f32 1.0, %v990_v35 }
 0x194   :  { %991 = vrcp.f32 %v368_v36  ;;  %v380_v40 = vand.u32 2147483648, %v368_v36  ;;  %v378_v42 = vand.u32 2147483647, %v368_v36  ;;  %vm374_vm6 = vweird.f32 %v368_v36 }
 0x196   :  { %v381_v44 = vor.u32 1.1754944e-38, %v380_v40  ;;  %vm379_vm8 = vcmp.eq.f32.partialorder %v378_v42, 8.507059e+37  ;;  %v156_v40 = vpop.f32.mrf.mxu0 }
 0x19a   :  { %v992_v37 = vpop.eup %991 }
 0x19b   :  { %v370_v38 = vmul.f32 %v992_v37, %v368_v36  ;;  %vm375_vm5 = vweird.f32 %v992_v37 }
 0x19c   :  { %vm376_vm7 = vmor %vm374_vm6, %vm375_vm5 }
 0x19d   :  { %v371_v39 = vsub.f32 1.0, %v370_v38  ;;  %v42_v38 = vld [vmem:[%s1397_s0 + $0x18] sm:$0xff] }
 0x19f   :  { %v372_v41 = vmul.f32 %v992_v37, %v371_v39  ;;  %v102_v39 = vld [vmem:[%s1401_s1 + $0x18] sm:$0xff] }
 0x1a0   :  { %940 = vmatmul.msk.f32.gmra.mxu0 %vm108_vm0, %v102_v39 }
 0x1a1   :  { %v373_v43 = vadd.f32 %v992_v37, %v372_v41 }
 0x1a3   :  { %v377_v46 = vsel %vm376_vm7, %v992_v37, %v373_v43 }
 0x1a4   :  { %v382_v47 = vsel %vm379_vm8, %v381_v44, %v377_v46 }
 0x1a5   :  { %v394_v48 = vmul.f32 %v392_v45, %v382_v47  ;;  %v401_v55 = vsub.f32 1.0, %v382_v47  ;;  %v407_v57 = vmul.f32 0.0, %v382_v47 }
 0x1a7   :  { %396 = vrot.lane.b32.xlu2 %v394_v48, %s1042_s16 }
 0x201   :  { %v397_v52 = vpop.permute.xlu2 %396 }
 0x202   :  { %v399_v53 = vadd.f32 %v397_v52, %v340_v31 }
 0x204   :  { %993 = vtanh.f32 %v399_v53 }
 0x20a   :  { %v994_v54 = vpop.eup %993 }
 0x20b   :  { %403 = vrot.lane.b32.xlu2 %v994_v54, %s1044_s28 }
 0x213   :  { %v305_v1 = vpop.f32.mrf.mxu2  ;;  %56 = vperm.xlu2 %984, %v41_v16  }
 0x214   :  { %v306_v2 = vadd.f32 %v1190_v28, %v305_v1 }
 0x216   :  { %328 = vst.msk [vmem:[#allocation2 + $0x8] sm:$0xff] %vm326_vm4, %v306_v2 }
 0x21d   :  { %v411_v5 = vld [vmem:[#allocation2 + $0x8] sm:$0xff]  ;;  %v159_v54 = vpop.f32.mrf.mxu0 }
 0x265   :  { %v404_v56 = vpop.permute.xlu2 %403 }
 0x266   :  { %v406_v58 = vmul.f32 %v404_v56, %v401_v55 }
 0x268   :  { %v1206_v59 = vadd.f32 %v407_v57, %v406_v58 }
 0x26a   :  { %413 = vrot.lane.b32.xlu0 %v1206_v59, %s1044_s28 }
 0x26d   :  { %v57_v32 = vpop.permute.xlu2 %56 }
 0x26e   :  { %vm75_vm14 = vcmp.eq.s32.totalorder %v57_v32, %v1162_v14 }
 0x26f   :  { %v931_v34 = vsel %vm75_vm14, 1.0, %v1043_v12 }
 0x270   :  { %947 = vmatmul.msk.f32.gmra.mxu1 %vm174_vm1, %v931_v34 }
 0x2dc   :  { %v414_v0 = vpop.permute.xlu0 %413 }
 0x2dd   :  { %962 = vmatmul.msk.f32.vlgmr.msrb.gmra.mxu3 %vm260_vm3, %v414_v0 }
 0x2de   :  { %565 = vmatpush.msrb.mxu3 %v1125_v6 }
 0x2e0   :  { %566 = vmatpush.msrb.mxu3 %v1130_v7 }
 0x2e2   :  { %567 = vmatpush.msrb.mxu3 %v1142_v10 }
 0x2e4   :  { %568 = vmatpush.msrb.mxu3 %v1149_v11 }
 0x2ed   :  { %v222_v41 = vpop.f32.mrf.mxu1 }
 0x2ee   :  { %v223_v42 = vadd.f32 %v222_v41, %v156_v40 }
 0x2f0   :  { %v246_v43 = vadd.f32 %v1183_v24, %v223_v42 }
 0x2f2   :  { %955 = vmatmul.msk.f32.gmra.mxu2 %vm260_vm3, %v246_v43 }
 0x360   :  { %v434_v3 = vpop.f32.mrf.mxu3 }
 0x361   :  { %v457_v4 = vadd.f32 %v434_v3, %v1176_v20  ;;  %v437_v8 = vadd.f32 %v434_v3, %v411_v5 }
 0x363   :  { %459 = vrot.lane.b32.xlu1 %v457_v4, %s1042_s16  ;;  %v963_v9 = vmul.f32 -1.442695, %v437_v8 }
 0x365   :  { %995 = vpow2.f32 %v963_v9 }
 0x36b   :  { %v996_v13 = vpop.eup %995 }
 0x36c   :  { %v441_v15 = vadd.f32 1.0, %v996_v13 }
 0x36e   :  { %997 = vrcp.f32 %v441_v15  ;;  %v453_v23 = vand.u32 2147483648, %v441_v15  ;;  %vm447_vm11 = vweird.f32 %v441_v15  ;;  %v451_v25 = vand.u32 2147483647, %v441_v15 }
 0x370   :  { %v454_v27 = vor.u32 1.1754944e-38, %v453_v23  ;;  %vm452_vm13 = vcmp.eq.f32.partialorder %v451_v25, 8.507059e+37 }
 0x374   :  { %v998_v17 = vpop.eup %997 }
 0x375   :  { %v443_v18 = vmul.f32 %v998_v17, %v441_v15  ;;  %vm448_vm10 = vweird.f32 %v998_v17  ;;  %v308_v52 = vpop.f32.mrf.mxu2 }
 0x376   :  { %vm449_vm12 = vmor %vm447_vm11, %vm448_vm10  ;;  %v309_v53 = vadd.f32 %v1190_v28, %v308_v52 }
 0x377   :  { %v444_v19 = vsub.f32 1.0, %v443_v18 }
 0x378   :  { %329 = vst.msk [vmem:[#allocation2 + $0x10] sm:$0xff] %vm326_vm4, %v309_v53 }
 0x379   :  { %v445_v21 = vmul.f32 %v998_v17, %v444_v19 }
 0x37b   :  { %v446_v22 = vadd.f32 %v998_v17, %v445_v21 }
 0x37d   :  { %v450_v26 = vsel %vm449_vm12, %v998_v17, %v446_v22 }
 0x37e   :  { %v455_v29 = vsel %vm452_vm13, %v454_v27, %v450_v26  ;;  %v43_v27 = vld [vmem:[%s1397_s0 + $0x20] sm:$0xff] }
 0x37f   :  { %v469_v44 = vsub.f32 1.0, %v455_v29  ;;  %v475_v46 = vmul.f32 %v455_v29, %v1206_v59  ;;  %v479_v63 = vld [vmem:[#allocation2 + $0x10] sm:$0xff] }
 0x3d5   :  { %v460_v30 = vpop.permute.xlu1 %459 }
 0x3d6   :  { %v462_v31 = vmul.f32 %v460_v30, %v455_v29  ;;  %v103_v29 = vld [vmem:[%s1401_s1 + $0x20] sm:$0xff] }
 0x3d7   :  { %941 = vmatmul.msk.f32.gmra.mxu0 %vm108_vm0, %v103_v29 }
 0x3d8   :  { %464 = vrot.lane.b32.xlu0 %v462_v31, %s1042_s16 }
 0x44a   :  { %v465_v35 = vpop.permute.xlu0 %464 }
 0x44b   :  { %v467_v36 = vadd.f32 %v465_v35, %v411_v5 }
 0x44d   :  { %999 = vtanh.f32 %v467_v36 }
 0x453   :  { %v1000_v37 = vpop.eup %999 }
 0x454   :  { %471 = vrot.lane.b32.xlu1 %v1000_v37, %s1044_s28 }
 0x45c   :  { %59 = vperm.xlu1 %983, %v42_v38   ;;  %v162_v38 = vpop.f32.mrf.mxu0 }
 0x4c6   :  { %v472_v45 = vpop.permute.xlu1 %471 }
 0x4c7   :  { %v474_v47 = vmul.f32 %v472_v45, %v469_v44 }
 0x4c9   :  { %v1243_v48 = vadd.f32 %v475_v46, %v474_v47 }
 0x4cb   :  { %481 = vrot.lane.b32.xlu2 %v1243_v48, %s1044_s28 }
 0x4ce   :  { %v60_v49 = vpop.permute.xlu1 %59 }
 0x4cf   :  { %vm76_vm15 = vcmp.eq.s32.totalorder %v60_v49, %v1162_v14 }
 0x4d0   :  { %v932_v50 = vsel %vm76_vm15, 1.0, %v1043_v12 }
 0x4d1   :  { %948 = vmatmul.msk.f32.gmra.mxu1 %vm174_vm1, %v932_v50 }
 0x525   :  { %v482_v51 = vpop.permute.xlu2 %481 }
 0x526   :  { %964 = vmatmul.msk.f32.vlgmr.msra.gmra.mxu3 %vm260_vm3, %v482_v51 }
 0x527   :  { %633 = vmatpush.msra.mxu3 %v1125_v6 }
 0x529   :  { %634 = vmatpush.msra.mxu3 %v1130_v7 }
 0x52b   :  { %635 = vmatpush.msra.mxu3 %v1142_v10 }
 0x52d   :  { %636 = vmatpush.msra.mxu3 %v1149_v11 }
 0x54e   :  { %v225_v55 = vpop.f32.mrf.mxu1 }
 0x54f   :  { %v226_v56 = vadd.f32 %v225_v55, %v159_v54 }
 0x551   :  { %v247_v57 = vadd.f32 %v1183_v24, %v226_v56 }
 0x553   :  { %956 = vmatmul.msk.f32.gmra.mxu2 %vm260_vm3, %v247_v57 }
 0x5a9   :  { %v502_v58 = vpop.f32.mrf.mxu3 }
 0x5aa   :  { %v525_v60 = vadd.f32 %v502_v58, %v1176_v20  ;;  %v505_v0 = vadd.f32 %v502_v58, %v479_v63 }
 0x5ac   :  { %527 = vrot.lane.b32.xlu0 %v525_v60, %s1042_s16  ;;  %v965_v1 = vmul.f32 -1.442695, %v505_v0 }
 0x5ae   :  { %1001 = vpow2.f32 %v965_v1 }
 0x5b4   :  { %v1002_v2 = vpop.eup %1001 }
 0x5b5   :  { %v509_v3 = vadd.f32 1.0, %v1002_v2 }
 0x5b7   :  { %1003 = vrcp.f32 %v509_v3  ;;  %v521_v15 = vand.u32 2147483648, %v509_v3  ;;  %vm515_vm5 = vweird.f32 %v509_v3  ;;  %v519_v16 = vand.u32 2147483647, %v509_v3 }
 0x5b9   :  { %v522_v18 = vor.u32 1.1754944e-38, %v521_v15  ;;  %vm520_vm7 = vcmp.eq.f32.partialorder %v519_v16, 8.507059e+37 }
 0x5bd   :  { %v1004_v4 = vpop.eup %1003 }
 0x5be   :  { %v511_v5 = vmul.f32 %v1004_v4, %v509_v3  ;;  %vm516_vm2 = vweird.f32 %v1004_v4 }
 0x5bf   :  { %vm517_vm6 = vmor %vm515_vm5, %vm516_vm2 }
 0x5c0   :  { %v512_v8 = vsub.f32 1.0, %v511_v5  ;;  %v104_v5 = vld [vmem:[%s1401_s1 + $0x28] sm:$0xff] }
 0x5c1   :  { %942 = vmatmul.msk.f32.gmra.mxu0 %vm108_vm0, %v104_v5 }
 0x5c2   :  { %v513_v9 = vmul.f32 %v1004_v4, %v512_v8 }
 0x5c4   :  { %v514_v13 = vadd.f32 %v1004_v4, %v513_v9 }
 0x5c6   :  { %v518_v17 = vsel %vm517_vm6, %v1004_v4, %v514_v13  ;;  %v44_v4 = vld [vmem:[%s1397_s0 + $0x28] sm:$0xff] }
 0x5c7   :  { %v523_v21 = vsel %vm520_vm7, %v522_v18, %v518_v17 }
 0x5c8   :  { %v537_v30 = vsub.f32 1.0, %v523_v21  ;;  %v543_v32 = vmul.f32 %v523_v21, %v1243_v48 }
 0x5d6   :  { %v311_v61 = vpop.f32.mrf.mxu2 }
 0x5d7   :  { %v312_v62 = vadd.f32 %v1190_v28, %v311_v61 }
 0x5d9   :  { %330 = vst.msk [vmem:[#allocation2 + $0x18] sm:$0xff] %vm326_vm4, %v312_v62 }
 0x5e0   :  { %v547_v46 = vld [vmem:[#allocation2 + $0x18] sm:$0xff] }
 0x61e   :  { %v528_v19 = vpop.permute.xlu0 %527 }
 0x61f   :  { %v530_v22 = vmul.f32 %v528_v19, %v523_v21 }
 0x621   :  { %532 = vrot.lane.b32.xlu2 %v530_v22, %s1042_s16 }
 0x63e   :  { %v165_v21 = vpop.f32.mrf.mxu0 }
 0x67b   :  { %v533_v23 = vpop.permute.xlu2 %532 }
 0x67c   :  { %v535_v25 = vadd.f32 %v533_v23, %v479_v63 }
 0x67e   :  { %1005 = vtanh.f32 %v535_v25 }
 0x684   :  { %v1006_v26 = vpop.eup %1005 }
 0x685   :  { %539 = vrot.lane.b32.xlu0 %v1006_v26, %s1044_s28 }
 0x68d   :  { %62 = vperm.xlu0 %982, %v43_v27  }
 0x6f7   :  { %v540_v31 = vpop.permute.xlu0 %539 }
 0x6f8   :  { %v542_v33 = vmul.f32 %v540_v31, %v537_v30 }
 0x6fa   :  { %v1273_v34 = vadd.f32 %v543_v32, %v542_v33 }
 0x6fc   :  { %549 = vrot.lane.b32.xlu1 %v1273_v34, %s1044_s28 }
 0x6ff   :  { %v63_v35 = vpop.permute.xlu0 %62 }
 0x700   :  { %vm77_vm8 = vcmp.eq.s32.totalorder %v63_v35, %v1162_v14 }
 0x701   :  { %v933_v36 = vsel %vm77_vm8, 1.0, %v1043_v12 }
 0x702   :  { %949 = vmatmul.msk.f32.gmra.mxu1 %vm174_vm1, %v933_v36 }
 0x76e   :  { %v550_v37 = vpop.permute.xlu1 %549 }
 0x76f   :  { %966 = vmatmul.msk.f32.vlgmr.msrb.gmra.mxu3 %vm260_vm3, %v550_v37 }
 0x770   :  { %701 = vmatpush.msrb.mxu3 %v1125_v6 }
 0x772   :  { %702 = vmatpush.msrb.mxu3 %v1130_v7 }
 0x774   :  { %703 = vmatpush.msrb.mxu3 %v1142_v10 }
 0x776   :  { %704 = vmatpush.msrb.mxu3 %v1149_v11 }
 0x77f   :  { %v228_v39 = vpop.f32.mrf.mxu1 }
 0x780   :  { %v229_v40 = vadd.f32 %v228_v39, %v162_v38 }
 0x782   :  { %v248_v41 = vadd.f32 %v1183_v24, %v229_v40 }
 0x784   :  { %957 = vmatmul.msk.f32.gmra.mxu2 %vm260_vm3, %v248_v41 }
 0x7f2   :  { %v570_v42 = vpop.f32.mrf.mxu3 }
 0x7f3   :  { %v593_v43 = vadd.f32 %v570_v42, %v1176_v20  ;;  %v573_v47 = vadd.f32 %v570_v42, %v547_v46 }
 0x7f5   :  { %595 = vrot.lane.b32.xlu2 %v593_v43, %s1042_s16  ;;  %v967_v49 = vmul.f32 -1.442695, %v573_v47 }
 0x7f7   :  { %1007 = vpow2.f32 %v967_v49 }
 0x7fd   :  { %v1008_v50 = vpop.eup %1007 }
 0x7fe   :  { %v577_v51 = vadd.f32 1.0, %v1008_v50 }
 0x800   :  { %1009 = vrcp.f32 %v577_v51  ;;  %v589_v57 = vand.u32 2147483648, %v577_v51  ;;  %vm583_vm10 = vweird.f32 %v577_v51  ;;  %v587_v58 = vand.u32 2147483647, %v577_v51 }
 0x802   :  { %v590_v61 = vor.u32 1.1754944e-38, %v589_v57  ;;  %vm588_vm12 = vcmp.eq.f32.partialorder %v587_v58, 8.507059e+37 }
 0x806   :  { %v1010_v52 = vpop.eup %1009 }
 0x807   :  { %v314_v44 = vpop.f32.mrf.mxu2  ;;  %v579_v53 = vmul.f32 %v1010_v52, %v577_v51  ;;  %vm584_vm9 = vweird.f32 %v1010_v52 }
 0x808   :  { %v315_v45 = vadd.f32 %v1190_v28, %v314_v44  ;;  %vm585_vm11 = vmor %vm583_vm10, %vm584_vm9 }
 0x809   :  { %v580_v54 = vsub.f32 1.0, %v579_v53  ;;  %v45_v53 = vld [vmem:[%s1397_s0 + $0x30] sm:$0xff] }
 0x80a   :  { %331 = vst.msk [vmem:[#allocation2 + $0x20] sm:$0xff] %vm326_vm4, %v315_v45 }
 0x80b   :  { %v581_v55 = vmul.f32 %v1010_v52, %v580_v54  ;;  %v105_v54 = vld [vmem:[%s1401_s1 + $0x30] sm:$0xff] }
 0x80c   :  { %943 = vmatmul.msk.f32.gmra.mxu0 %vm108_vm0, %v105_v54 }
 0x80d   :  { %v582_v56 = vadd.f32 %v1010_v52, %v581_v55 }
 0x80f   :  { %v586_v60 = vsel %vm585_vm11, %v1010_v52, %v582_v56 }
 0x810   :  { %v591_v63 = vsel %vm588_vm12, %v590_v61, %v586_v60 }
 0x811   :  { %v605_v8 = vsub.f32 1.0, %v591_v63  ;;  %v611_v13 = vmul.f32 %v591_v63, %v1273_v34  ;;  %v615_v31 = vld [vmem:[#allocation2 + $0x20] sm:$0xff] }
 0x84f   :  { %v596_v62 = vpop.permute.xlu2 %595 }
 0x850   :  { %v598_v0 = vmul.f32 %v596_v62, %v591_v63 }
 0x852   :  { %600 = vrot.lane.b32.xlu1 %v598_v0, %s1042_s16 }
 0x889   :  { %v168_v0 = vpop.f32.mrf.mxu0 }
 0x8c4   :  { %v601_v1 = vpop.permute.xlu1 %600 }
 0x8c5   :  { %v603_v2 = vadd.f32 %v601_v1, %v547_v46 }
 0x8c7   :  { %1011 = vtanh.f32 %v603_v2 }
 0x8cd   :  { %v1012_v3 = vpop.eup %1011 }
 0x8ce   :  { %607 = vrot.lane.b32.xlu2 %v1012_v3, %s1044_s28 }
 0x8d6   :  { %65 = vperm.xlu2 %984, %v44_v4  }
 0x928   :  { %v608_v9 = vpop.permute.xlu2 %607 }
 0x929   :  { %v610_v15 = vmul.f32 %v608_v9, %v605_v8 }
 0x92b   :  { %v1301_v16 = vadd.f32 %v611_v13, %v610_v15 }
 0x92d   :  { %617 = vrot.lane.b32.xlu0 %v1301_v16, %s1044_s28 }
 0x930   :  { %v66_v17 = vpop.permute.xlu2 %65 }
 0x931   :  { %vm78_vm13 = vcmp.eq.s32.totalorder %v66_v17, %v1162_v14 }
 0x932   :  { %v934_v18 = vsel %vm78_vm13, 1.0, %v1043_v12 }
 0x933   :  { %950 = vmatmul.msk.f32.gmra.mxu1 %vm174_vm1, %v934_v18 }
 0x99f   :  { %v618_v19 = vpop.permute.xlu0 %617 }
 0x9a0   :  { %968 = vmatmul.msk.f32.vlgmr.msra.gmra.mxu3 %vm260_vm3, %v618_v19 }
 0x9a1   :  { %769 = vmatpush.msra.mxu3 %v1125_v6 }
 0x9a3   :  { %770 = vmatpush.msra.mxu3 %v1130_v7 }
 0x9a5   :  { %771 = vmatpush.msra.mxu3 %v1142_v10 }
 0x9a7   :  { %772 = vmatpush.msra.mxu3 %v1149_v11 }
 0x9b0   :  { %v231_v22 = vpop.f32.mrf.mxu1 }
 0x9b1   :  { %v232_v23 = vadd.f32 %v231_v22, %v165_v21 }
 0x9b3   :  { %v249_v25 = vadd.f32 %v1183_v24, %v232_v23 }
 0x9b5   :  { %958 = vmatmul.msk.f32.gmra.mxu2 %vm260_vm3, %v249_v25 }
 0xa23   :  { %v638_v26 = vpop.f32.mrf.mxu3 }
 0xa24   :  { %v661_v27 = vadd.f32 %v638_v26, %v1176_v20  ;;  %v641_v32 = vadd.f32 %v638_v26, %v615_v31 }
 0xa26   :  { %663 = vrot.lane.b32.xlu1 %v661_v27, %s1042_s16  ;;  %v969_v33 = vmul.f32 -1.442695, %v641_v32 }
 0xa28   :  { %1013 = vpow2.f32 %v969_v33 }
 0xa2e   :  { %v1014_v35 = vpop.eup %1013 }
 0xa2f   :  { %v645_v36 = vadd.f32 1.0, %v1014_v35  ;;  %v46_v35 = vld [vmem:[%s1397_s0 + $0x38] sm:$0xff] }
 0xa31   :  { %1015 = vrcp.f32 %v645_v36  ;;  %v657_v42 = vand.u32 2147483648, %v645_v36  ;;  %vm651_vm15 = vweird.f32 %v645_v36  ;;  %v655_v43 = vand.u32 2147483647, %v645_v36 }
 0xa33   :  { %v658_v45 = vor.u32 1.1754944e-38, %v657_v42  ;;  %vm656_vm5 = vcmp.eq.f32.partialorder %v655_v43, 8.507059e+37 }
 0xa37   :  { %v1016_v37 = vpop.eup %1015 }
 0xa38   :  { %v317_v29 = vpop.f32.mrf.mxu2  ;;  %v647_v38 = vmul.f32 %v1016_v37, %v645_v36  ;;  %vm652_vm14 = vweird.f32 %v1016_v37  ;;  %v106_v36 = vld [vmem:[%s1401_s1 + $0x38] sm:$0xff] }
 0xa39   :  { %v318_v30 = vadd.f32 %v1190_v28, %v317_v29  ;;  %vm653_vm2 = vmor %vm651_vm15, %vm652_vm14  ;;  %944 = vmatmul.msk.f32.gmra.mxu0 %vm108_vm0, %v106_v36 }
 0xa3a   :  { %v648_v39 = vsub.f32 1.0, %v647_v38 }
 0xa3b   :  { %332 = vst.msk [vmem:[#allocation2 + $0x28] sm:$0xff] %vm326_vm4, %v318_v30 }
 0xa3c   :  { %v649_v40 = vmul.f32 %v1016_v37, %v648_v39 }
 0xa3e   :  { %v650_v41 = vadd.f32 %v1016_v37, %v649_v40 }
 0xa40   :  { %v654_v44 = vsel %vm653_vm2, %v1016_v37, %v650_v41 }
 0xa41   :  { %v659_v47 = vsel %vm656_vm5, %v658_v45, %v654_v44 }
 0xa42   :  { %v673_v55 = vsub.f32 1.0, %v659_v47  ;;  %v679_v57 = vmul.f32 %v659_v47, %v1301_v16 }
 0xa98   :  { %v664_v46 = vpop.permute.xlu1 %663 }
 0xa99   :  { %v666_v49 = vmul.f32 %v664_v46, %v659_v47 }
 0xa9b   :  { %668 = vrot.lane.b32.xlu0 %v666_v49, %s1042_s16 }
 0xab6   :  { %v171_v45 = vpop.f32.mrf.mxu0 }
 0xb0d   :  { %v669_v50 = vpop.permute.xlu0 %668 }
 0xb0e   :  { %v671_v51 = vadd.f32 %v669_v50, %v615_v31 }
 0xb10   :  { %1017 = vtanh.f32 %v671_v51 }
 0xb16   :  { %v1018_v52 = vpop.eup %1017 }
 0xb17   :  { %675 = vrot.lane.b32.xlu1 %v1018_v52, %s1044_s28 }
 0xb1f   :  { %68 = vperm.xlu1 %983, %v45_v53  }
 0xb89   :  { %v676_v56 = vpop.permute.xlu1 %675 }
 0xb8a   :  { %v678_v58 = vmul.f32 %v676_v56, %v673_v55 }
 0xb8c   :  { %v1329_v60 = vadd.f32 %v679_v57, %v678_v58 }
 0xb8e   :  { %685 = vrot.lane.b32.xlu2 %v1329_v60, %s1044_s28 }
 0xb91   :  { %v69_v61 = vpop.permute.xlu1 %68 }
 0xb92   :  { %vm79_vm6 = vcmp.eq.s32.totalorder %v69_v61, %v1162_v14 }
 0xb93   :  { %v935_v62 = vsel %vm79_vm6, 1.0, %v1043_v12  ;;  %vm923_vm6 = vcmask 7168  }
 0xb94   :  { %951 = vmatmul.msk.f32.gmra.mxu1 %vm174_vm1, %v935_v62 }
 0xbe8   :  { %v686_v63 = vpop.permute.xlu2 %685 }
 0xbe9   :  { %970 = vmatmul.msk.f32.vlgmr.msrb.gmra.mxu3 %vm260_vm3, %v686_v63 }
 0xbea   :  { %837 = vmatpush.msrb.mxu3 %v1125_v6 }
 0xbec   :  { %838 = vmatpush.msrb.mxu3 %v1130_v7  ;;  %v683_v7 = vld [vmem:[#allocation2 + $0x28] sm:$0xff] }
 0xbee   :  { %839 = vmatpush.msrb.mxu3 %v1142_v10 }
 0xbf0   :  { %840 = vmatpush.msrb.mxu3 %v1149_v11 }
 0xc11   :  { %v234_v1 = vpop.f32.mrf.mxu1 }
 0xc12   :  { %v235_v2 = vadd.f32 %v234_v1, %v168_v0 }
 0xc14   :  { %v250_v3 = vadd.f32 %v1183_v24, %v235_v2 }
 0xc16   :  { %959 = vmatmul.msk.f32.gmra.mxu2 %vm260_vm3, %v250_v3 }
 0xc6c   :  { %v706_v4 = vpop.f32.mrf.mxu3 }
 0xc6d   :  { %v729_v5 = vadd.f32 %v706_v4, %v1176_v20  ;;  %v709_v10 = vadd.f32 %v706_v4, %v683_v7 }
 0xc6f   :  { %731 = vrot.lane.b32.xlu0 %v729_v5, %s1042_s16  ;;  %v971_v11 = vmul.f32 -1.442695, %v709_v10 }
 0xc71   :  { %1019 = vpow2.f32 %v971_v11 }
 0xc77   :  { %v1020_v9 = vpop.eup %1019 }
 0xc78   :  { %v713_v13 = vadd.f32 1.0, %v1020_v9 }
 0xc7a   :  { %1021 = vrcp.f32 %v713_v13  ;;  %v725_v22 = vand.u32 2147483648, %v713_v13  ;;  %vm719_vm8 = vweird.f32 %v713_v13  ;;  %v723_v23 = vand.u32 2147483647, %v713_v13 }
 0xc7c   :  { %v726_v26 = vor.u32 1.1754944e-38, %v725_v22  ;;  %vm724_vm10 = vcmp.eq.f32.partialorder %v723_v23, 8.507059e+37 }
 0xc80   :  { %v1022_v15 = vpop.eup %1021 }
 0xc81   :  { %v715_v17 = vmul.f32 %v1022_v15, %v713_v13  ;;  %vm720_vm7 = vweird.f32 %v1022_v15 }
 0xc82   :  { %vm721_vm9 = vmor %vm719_vm8, %vm720_vm7 }
 0xc83   :  { %v716_v18 = vsub.f32 1.0, %v715_v17 }
 0xc85   :  { %v717_v19 = vmul.f32 %v1022_v15, %v716_v18 }
 0xc87   :  { %v718_v21 = vadd.f32 %v1022_v15, %v717_v19 }
 0xc89   :  { %v722_v25 = vsel %vm721_vm9, %v1022_v15, %v718_v21 }
 0xc8a   :  { %v727_v29 = vsel %vm724_vm10, %v726_v26, %v722_v25 }
 0xc8b   :  { %v741_v37 = vsub.f32 1.0, %v727_v29  ;;  %v747_v39 = vmul.f32 %v727_v29, %v1329_v60 }
 0xc99   :  { %v320_v8 = vpop.f32.mrf.mxu2 }
 0xc9a   :  { %v321_v6 = vadd.f32 %v1190_v28, %v320_v8 }
 0xc9c   :  { %333 = vst.msk [vmem:[#allocation2 + $0x30] sm:$0xff] %vm326_vm4, %v321_v6 }
 0xca3   :  { %v751_v52 = vld [vmem:[#allocation2 + $0x30] sm:$0xff] }
 0xce1   :  { %v732_v27 = vpop.permute.xlu0 %731 }
 0xce2   :  { %v734_v30 = vmul.f32 %v732_v27, %v727_v29 }
 0xce4   :  { %736 = vrot.lane.b32.xlu2 %v734_v30, %s1042_s16 }
 0xd3e   :  { %v737_v31 = vpop.permute.xlu2 %736 }
 0xd3f   :  { %v739_v32 = vadd.f32 %v737_v31, %v683_v7 }
 0xd41   :  { %1023 = vtanh.f32 %v739_v32 }
 0xd47   :  { %v1024_v33 = vpop.eup %1023 }
 0xd48   :  { %743 = vrot.lane.b32.xlu0 %v1024_v33, %s1044_s28 }
 0xd50   :  { %71 = vperm.xlu0 %982, %v46_v35  }
 0xdba   :  { %v744_v38 = vpop.permute.xlu0 %743 }
 0xdbb   :  { %v746_v40 = vmul.f32 %v744_v38, %v741_v37 }
 0xdbd   :  { %v1357_v41 = vadd.f32 %v747_v39, %v746_v40  ;;  %v988_v39 = vld [vmem:[%s1406_s9] ss:$0 sm:$0xff] }
 0xdbf   :  { %753 = vrot.lane.b32.xlu1 %v1357_v41, %s1044_s28 }
 0xdc2   :  { %v72_v42 = vpop.permute.xlu0 %71 }
 0xdc3   :  { %vm80_vm11 = vcmp.eq.s32.totalorder %v72_v42, %v1162_v14 }
 0xdc4   :  { %v936_v43 = vsel %vm80_vm11, 1.0, %v1043_v12 }
 0xdc5   :  { %952 = vmatmul.msk.f32.gmra.mxu1 %vm174_vm1, %v936_v43 }
 0xe31   :  { %v754_v44 = vpop.permute.xlu1 %753 }
 0xe32   :  { %972 = vmatmul.msk.f32.vlgmr.msra.gmra.mxu3 %vm260_vm3, %v754_v44  ;;  %v477_v44 = vadd.f32 %v1243_v48, %v1206_v59 }
 0xe42   :  { %v237_v46 = vpop.f32.mrf.mxu1 }
 0xe43   :  { %v238_v47 = vadd.f32 %v237_v46, %v171_v45  ;;  %v545_v45 = vadd.f32 %v1273_v34, %v477_v44  ;;  %v902_v34 = vstv %s1407_s10 }
 0xe45   :  { %v251_v49 = vadd.f32 %v1183_v24, %v238_v47  ;;  %v613_v46 = vadd.f32 %v1301_v16, %v545_v45 }
 0xe47   :  { %960 = vmatmul.msk.f32.gmra.mxu2 %vm260_vm3, %v251_v49  ;;  %v681_v47 = vadd.f32 %v1329_v60, %v613_v46 }
 0xeb5   :  { %v774_v50 = vpop.f32.mrf.mxu3 }
 0xeb6   :  { %v797_v51 = vadd.f32 %v774_v50, %v1176_v20  ;;  %v777_v53 = vadd.f32 %v774_v50, %v751_v52 }
 0xeb8   :  { %799 = vrot.lane.b32.xlu2 %v797_v51, %s1042_s16  ;;  %v973_v54 = vmul.f32 -1.442695, %v777_v53 }
 0xeba   :  { %1025 = vpow2.f32 %v973_v54 }
 0xec0   :  { %v1026_v55 = vpop.eup %1025 }
 0xec1   :  { %v781_v56 = vadd.f32 1.0, %v1026_v55 }
 0xec3   :  { %1027 = vrcp.f32 %v781_v56  ;;  %v793_v63 = vand.u32 2147483648, %v781_v56  ;;  %vm787_vm1 = vweird.f32 %v781_v56  ;;  %v791_v0 = vand.u32 2147483647, %v781_v56 }
 0xec5   :  { %v794_v1 = vor.u32 1.1754944e-38, %v793_v63 }
 0xec9   :  { %v1028_v24 = vpop.eup %1027 }
 0xeca   :  { %v323_v14 = vpop.f32.mrf.mxu2  ;;  %v783_v57 = vmul.f32 %v1028_v24, %v781_v56  ;;  %vm788_vm0 = vweird.f32 %v1028_v24 }
 0xecb   :  { %v324_v12 = vadd.f32 %v1190_v28, %v323_v14  ;;  %vm789_vm12 = vmor %vm787_vm1, %vm788_vm0 }
 0xecc   :  { %v784_v58 = vsub.f32 1.0, %v783_v57 }
 0xecd   :  { %334 = vst.msk [vmem:[#allocation2 + $0x38] sm:$0xff] %vm326_vm4, %v324_v12  ;;  %vm792_vm4 = vcmp.eq.f32.partialorder %v791_v0, 8.507059e+37  ;;  %v749_v12 = vadd.f32 %v1357_v41, %v681_v47 }
 0xece   :  { %v785_v61 = vmul.f32 %v1028_v24, %v784_v58 }
 0xed0   :  { %v786_v62 = vadd.f32 %v1028_v24, %v785_v61 }
 0xed2   :  { %v790_v28 = vsel %vm789_vm12, %v1028_v24, %v786_v62 }
 0xed3   :  { %v795_v3 = vsel %vm792_vm4, %v794_v1, %v790_v28 }
 0xed4   :  { %v809_v7 = vsub.f32 1.0, %v795_v3  ;;  %v815_v11 = vmul.f32 %v795_v3, %v1357_v41  ;;  %v819_v19 = vld [vmem:[#allocation2 + $0x38] sm:$0xff] }
 0xf12   :  { %v800_v2 = vpop.permute.xlu2 %799 }
 0xf13   :  { %v802_v4 = vmul.f32 %v800_v2, %v795_v3 }
 0xf15   :  { %804 = vrot.lane.b32.xlu1 %v802_v4, %s1042_s16 }
 0xf87   :  { %v805_v5 = vpop.permute.xlu1 %804 }
 0xf88   :  { %v807_v8 = vadd.f32 %v805_v5, %v751_v52 }
 0xf8a   :  { %1029 = vtanh.f32 %v807_v8 }
 0xf90   :  { %v1030_v6 = vpop.eup %1029 }
 0xf91   :  { %811 = vrot.lane.b32.xlu2 %v1030_v6, %s1044_s28 }
 0xfeb   :  { %v812_v10 = vpop.permute.xlu2 %811 }
 0xfec   :  { %v814_v9 = vmul.f32 %v812_v10, %v809_v7 }
 0xfee   :  { %v816_v13 = vadd.f32 %v815_v11, %v814_v9 }
 0xff0   :  { %821 = vrot.lane.b32.xlu0 %v816_v13, %s1044_s28  ;;  %v817_v53 = vadd.f32 %v816_v13, %v749_v12 }
0x1062   :  { %v822_v15 = vpop.permute.xlu0 %821 }
0x1063   :  { %974 = vmatmul.msk.f32.vlgmr.msrb.gmra.mxu3 %vm260_vm3, %v822_v15 }
0x10e6   :  { %v842_v17 = vpop.f32.mrf.mxu3 }
0x10e7   :  { %v865_v18 = vadd.f32 %v842_v17, %v1176_v20  ;;  %v845_v21 = vadd.f32 %v842_v17, %v819_v19 }
0x10e9   :  { %867 = vrot.lane.b32.xlu1 %v865_v18, %s1042_s16  ;;  %v975_v22 = vmul.f32 -1.442695, %v845_v21 }
0x10eb   :  { %1031 = vpow2.f32 %v975_v22 }
0x10f1   :  { %v1032_v23 = vpop.eup %1031  ;;  %890 = vrot.lane.b32.xlu1 %v988_v39, %s1045_s29 }
0x10f2   :  { %v849_v25 = vadd.f32 1.0, %v1032_v23 }
0x10f4   :  { %1033 = vrcp.f32 %v849_v25  ;;  %v861_v32 = vand.u32 2147483648, %v849_v25  ;;  %vm855_vm14 = vweird.f32 %v849_v25  ;;  %v859_v33 = vand.u32 2147483647, %v849_v25 }
0x10f6   :  { %v862_v35 = vor.u32 1.1754944e-38, %v861_v32  ;;  %vm860_vm2 = vcmp.eq.f32.partialorder %v859_v33, 8.507059e+37 }
0x10fa   :  { %v1034_v26 = vpop.eup %1033 }
0x10fb   :  { %v851_v27 = vmul.f32 %v1034_v26, %v849_v25  ;;  %vm856_vm13 = vweird.f32 %v1034_v26 }
0x10fc   :  { %vm857_vm15 = vmor %vm855_vm14, %vm856_vm13 }
0x10fd   :  { %v852_v29 = vsub.f32 1.0, %v851_v27 }
0x10ff   :  { %v853_v30 = vmul.f32 %v1034_v26, %v852_v29 }
0x1101   :  { %v854_v31 = vadd.f32 %v1034_v26, %v853_v30 }
0x1103   :  { %v858_v20 = vsel %vm857_vm15, %v1034_v26, %v854_v31 }
0x1104   :  { %v863_v37 = vsel %vm860_vm2, %v862_v35, %v858_v20 }
0x1105   :  { %v877_v49 = vsub.f32 1.0, %v863_v37  ;;  %v883_v51 = vmul.f32 %v863_v37, %v816_v13 }
0x115b   :  { %v868_v36 = vpop.permute.xlu1 %867 }
0x115c   :  { %v870_v38 = vmul.f32 %v868_v36, %v863_v37 }
0x115e   :  { %872 = vrot.lane.b32.xlu2 %v870_v38, %s1042_s16 }
0x1163   :  { %v891_v55 = vpop.permute.xlu1 %890 }
0x11b8   :  { %v873_v40 = vpop.permute.xlu2 %872 }
0x11b9   :  { %v875_v42 = vadd.f32 %v873_v40, %v819_v19 }
0x11bb   :  { %1035 = vtanh.f32 %v875_v42 }
0x11c1   :  { %v1036_v43 = vpop.eup %1035 }
0x11c2   :  { %879 = vrot.lane.b32.xlu0 %v1036_v43, %s1044_s28 }
0x1234   :  { %v880_v50 = vpop.permute.xlu0 %879 }
0x1235   :  { %v882_v14 = vmul.f32 %v880_v50, %v877_v49 }
0x1237   :  { %v884_v52 = vadd.f32 %v883_v51, %v882_v14 }
0x1239   :  { %v885_v54 = vadd.f32 %v884_v52, %v817_v53 }
0x123b   :  { %v886_v56 = vmul.f32 0.125, %v885_v54 }
0x123d   :  { %v893_v24 = vmul.f32 %v891_v55, %v886_v56 }
0x123f   :  { %895 = vrot.lane.b32.xlu2 %v893_v24, %s1044_s28 }
0x1299   :  { %v896_v59 = vpop.permute.xlu2 %895 }
0x129a   :  { %v898_v48 = vsel %vm260_vm3, %v896_v59, 0.0 }
0x129b   :  { %899 = vadd.xlane.f32.xlu0 %v898_v48 }
0x130e   :  { %v900_v16 = vpop.xlane.xlu0 %899 }
0x130f   :  { %v903_v60 = vadd.f32 %v902_v34, %v900_v16 }
0x1311   :  { %v976_v57 = vmul.f32 -1.442695, %v903_v60 }
0x1313   :  { %1037 = vpow2.f32 %v976_v57 }
0x1319   :  { %v1038_v41 = vpop.eup %1037 }
0x131a   :  { %v907_v58 = vadd.f32 1.0, %v1038_v41 }
0x131c   :  { %1039 = vrcp.f32 %v907_v58  ;;  %v919_v0 = vand.u32 2147483648, %v907_v58  ;;  %v917_v1 = vand.u32 2147483647, %v907_v58  ;;  %vm913_vm3 = vweird.f32 %v907_v58 }
0x131e   :  { %v920_v3 = vor.u32 1.1754944e-38, %v919_v0  ;;  %vm918_vm8 = vcmp.eq.f32.partialorder %v917_v1, 8.507059e+37 }
0x1322   :  { %v1040_v61 = vpop.eup %1039 }
0x1323   :  { %v909_v62 = vmul.f32 %v1040_v61, %v907_v58  ;;  %vm914_vm5 = vweird.f32 %v1040_v61 }
0x1324   :  { %vm915_vm7 = vmor %vm913_vm3, %vm914_vm5 }
0x1325   :  { %v910_v63 = vsub.f32 1.0, %v909_v62 }
0x1327   :  { %v911_v28 = vmul.f32 %v1040_v61, %v910_v63 }
0x1329   :  { %v912_v2 = vadd.f32 %v1040_v61, %v911_v28 }
0x132b   :  { %v916_v4 = vsel %vm915_vm7, %v1040_v61, %v912_v2 }
0x132c   :  { %v921_v5 = vsel %vm918_vm8, %v920_v3, %v916_v4 }
0x132d   :  { %924 = vst.msk [vmem:[%s1408_s11] sm:$0xff] %vm923_vm6, %v921_v5 }

</bundles_post_ra>
